<compile_context>
chip_gen: v5e
topology: v5e:2x2
jax: 0.10.0
libtpu: 0.0.40
codegen_flags: <defaults>
</compile_context>

<pallas_src>
import math
import jax
import jax.numpy as jnp
from jax.experimental import pallas as pl
from jax.experimental.pallas import tpu as pltpu


def _round_up(n: int, m: int) -> int:
    return (n + m - 1) // m * m


def _vmem_budget_bytes() -> int:
    """Usable VMEM per core with ~18% headroom (v5e/v6e: ~105MiB, v7x: ~52MiB)."""
    cap = 64 * 1024 * 1024  # conservative default (valid on every generation)
    try:
        info = pltpu.get_tpu_info()
        cap = int(getattr(info, "vmem_capacity_bytes", cap))
    except Exception:
        pass
    return int(cap * 0.82)


# --------------------------------------------------------------------------
# Kernels
# --------------------------------------------------------------------------
def mlp_kernel_resident(x_ref, w1_ref, b1_ref, w2_ref, b2_ref, o_ref):
    """Fast path: both weight matrices resident in VMEM, one row tile per step."""
    h = jnp.dot(x_ref[...], w1_ref[...], preferred_element_type=jnp.float32)
    h = jnp.maximum(h + b1_ref[...], 0.0)                  # (tm, Cout) + (1, Cout)
    y = jnp.dot(h.astype(w2_ref.dtype), w2_ref[...],
                preferred_element_type=jnp.float32)
    o_ref[...] = jnp.maximum(y + b2_ref[...], 0.0).astype(o_ref.dtype)


def mlp_kernel_tiled(x_ref, w1_ref, b1_ref, w2_ref, b2_ref, o_ref, acc_ref):
    """Fallback: hidden dimension chunked on grid axis 1 (reduction axis)."""
    k = pl.program_id(1)

    @pl.when(k == 0)
    def _():
        acc_ref[...] = jnp.zeros_like(acc_ref)

    # Hidden chunk kc: h_kc = relu(x @ W1[:, kc] + b1[kc])   -- full C_in reduction
    h = jnp.dot(x_ref[...], w1_ref[...], preferred_element_type=jnp.float32)
    h = jnp.maximum(h + b1_ref[...], 0.0)
    # Accumulate its contribution to y: acc += h_kc @ W2[kc, :]
    acc_ref[...] += jnp.dot(h.astype(w2_ref.dtype), w2_ref[...],
                            preferred_element_type=jnp.float32)

    @pl.when(k == pl.num_programs(1) - 1)
    def _():
        o_ref[...] = jnp.maximum(acc_ref[...] + b2_ref[...], 0.0).astype(o_ref.dtype)


# --------------------------------------------------------------------------
# Parameter preparation (hoisted out of the per-call path)
# --------------------------------------------------------------------------
def prepare_mlp_params(w1, b1, w2, b2, *, compute_dtype=jnp.bfloat16):
    """Pad feature dims to 128 multiples and cast weights once.

    w1: (C_in, C_out), w2: (C_out, C_out)  -- stored transposed vs. nn.Linear so
    the kernel computes x @ W (== x @ W_torch.T).  b1/b2: (1, C_out) or (C_out,).
    """
    C_in, C_out = w1.shape
    C_in_p, C_out_p = _round_up(C_in, 128), _round_up(C_out, 128)

    def pad2(a, rows, cols, dt):
        a = jnp.asarray(a).astype(dt)
        if a.shape == (rows, cols):
            return a                               # already aligned: no copy
        return jnp.zeros((rows, cols), dt).at[:a.shape[0], :a.shape[1]].set(a)

    return dict(
        w1=pad2(w1, C_in_p, C_out_p, compute_dtype),
        w2=pad2(w2, C_out_p, C_out_p, compute_dtype),
        b1=pad2(jnp.asarray(b1).reshape(1, -1), 1, C_out_p, jnp.float32),
        b2=pad2(jnp.asarray(b2).reshape(1, -1), 1, C_out_p, jnp.float32),
        c_in=C_in, c_out=C_out, compute_dtype=compute_dtype,
    )


# --------------------------------------------------------------------------
# Wrapper
# --------------------------------------------------------------------------
def mlp_pallas(x, params, *, tm=None, tk=None, out_dtype=None, force_tiled=False):
    """x: (N, C_in) -> (N, C_out) = relu(relu(x @ W1 + b1) @ W2 + b2)."""
    N, C_in = x.shape
    assert C_in == params["c_in"], (C_in, params["c_in"])
    C_out = params["c_out"]
    w1p, b1p, w2p, b2p = params["w1"], params["b1"], params["w2"], params["b2"]
    cdt = params["compute_dtype"]
    c_isz = jnp.dtype(cdt).itemsize
    C_in_p, C_out_p = w1p.shape
    out_dtype = x.dtype if out_dtype is None else out_dtype
    out_isz = jnp.dtype(out_dtype).itemsize

    budget = _vmem_budget_bytes()
    weight_bytes = (w1p.size + w2p.size) * c_isz + (b1p.size + b2p.size) * 4
    use_tiled = force_tiled or (weight_bytes > 0.65 * budget)

    def fast_est(tm_):
        return (weight_bytes                      # resident weights (single copy)
                + 2 * tm_ * C_in_p * c_isz        # x tile, double-buffered
                + 2 * tm_ * C_out_p * out_isz     # out tile, double-buffered
                + 4 * tm_ * C_out_p)              # f32 hidden intermediate

    # ---- row tile selection ----
    if tm is None:
        if N <= 256:
            tm = _round_up(max(N, 8), 8)          # single tile, minimal row pad
        else:
            tm = 512 if N > 512 else 256          # 256-multiples (v6e/v7x MXU),
            if not use_tiled and fast_est(tm) > budget:   # >=2 grid steps for v7x
                tm = 256
    N_p = _round_up(N, tm)

    # ---- x: cast once; skip the padding copy when already aligned ----
    xp = x.astype(cdt)
    if (N_p, C_in_p) != (N, C_in):
        xp = jnp.zeros((N_p, C_in_p), cdt).at[:N, :C_in].set(xp)

    flops = 2 * N_p * C_in_p * C_out_p + 2 * N_p * C_out_p * C_out_p

    if not use_tiled:
        # ----------------- fast path: resident weights -----------------
        vmem_est = fast_est(tm)
        vmem_limit = int(min(max(vmem_est * 1.25, 16 * 1024 * 1024), budget))
        bytes_accessed = (xp.size * c_isz + weight_bytes + N_p * C_out_p * out_isz)
        const_spec = pl.BlockSpec(memory_space=pltpu.MemorySpace.VMEM)

        out_p = pl.pallas_call(
            mlp_kernel_resident,
            out_shape=jax.ShapeDtypeStruct((N_p, C_out_p), out_dtype),
            grid_spec=pltpu.PrefetchScalarGridSpec(
                num_scalar_prefetch=0,
                grid=(N_p // tm,),
                in_specs=[
                    pl.BlockSpec((tm, C_in_p), lambda i: (i, 0)),   # x row tile
                    const_spec, const_spec,                         # W1, b1
                    const_spec, const_spec,                         # W2, b2
                ],
                out_specs=pl.BlockSpec((tm, C_out_p), lambda i: (i, 0)),
            ),
            compiler_params=pltpu.CompilerParams(
                dimension_semantics=("parallel",),
                vmem_limit_bytes=vmem_limit),
            cost_estimate=pl.CostEstimate(
                flops=flops, transcendentals=0, bytes_accessed=int(bytes_accessed)),
        )(xp, w1p, b1p, w2p, b2p)
        return out_p[:N, :C_out]

    # ----------------- fallback: hidden-dim tiled, streamed weights -----------------
    if tk is None:
        tk = 512 if C_out_p % 512 == 0 else (256 if C_out_p % 256 == 0 else 128)

    def tiled_est(tm_, tk_):
        return (2 * tm_ * C_in_p * c_isz          # x tile
                + 2 * C_in_p * tk_ * c_isz        # W1 column block
                + 2 * tk_ * C_out_p * c_isz       # W2 row block
                + 2 * tk_ * 4 + C_out_p * 4       # bias blocks
                + 4 * tm_ * C_out_p               # f32 accumulator scratch
                + 4 * tm_ * tk_                   # f32 hidden chunk
                + 2 * tm_ * C_out_p * out_isz)    # out tile
    while tk > 128 and tiled_est(tm, tk) > budget:
        tk //= 2
    vmem_limit = int(min(max(tiled_est(tm, tk) * 1.25, 16 * 1024 * 1024), budget))
    n_row = N_p // tm
    bytes_accessed = (xp.size * c_isz + n_row * weight_bytes
                      + N_p * C_out_p * out_isz)

    out_p = pl.pallas_call(
        mlp_kernel_tiled,
        out_shape=jax.ShapeDtypeStruct((N_p, C_out_p), out_dtype),
        grid_spec=pltpu.PrefetchScalarGridSpec(
            num_scalar_prefetch=0,
            grid=(n_row, C_out_p // tk),          # reduction (hidden) axis last
            in_specs=[
                pl.BlockSpec((tm, C_in_p), lambda i, k: (i, 0)),   # x row tile
                pl.BlockSpec((C_in_p, tk), lambda i, k: (0, k)),   # W1[:, kc]
                pl.BlockSpec((1, tk),      lambda i, k: (0, k)),   # b1[kc]
                pl.BlockSpec((tk, C_out_p), lambda i, k: (k, 0)),  # W2[kc, :]
                pl.BlockSpec((1, C_out_p), lambda i, k: (0, 0)),   # b2
            ],
            out_specs=pl.BlockSpec((tm, C_out_p), lambda i, k: (i, 0)),
            scratch_shapes=[pltpu.VMEM((tm, C_out_p), jnp.float32)],
        ),
        compiler_params=pltpu.CompilerParams(
            dimension_semantics=("parallel", "arbitrary"),
            vmem_limit_bytes=vmem_limit),
        cost_estimate=pl.CostEstimate(
            flops=flops, transcendentals=0, bytes_accessed=int(bytes_accessed)),
    )(xp, w1p, b1p, w2p, b2p)
    return out_p[:N, :C_out]


# --------------------------------------------------------------------------
# PyTorch-style init + self-test
# --------------------------------------------------------------------------
def init_linear_params(key, in_features, out_features, dtype=jnp.float32):
    # Mimic nn.Linear default init: U(-1/sqrt(fan_in), 1/sqrt(fan_in)).
    kw, kb = jax.random.split(key)
    bound = 1.0 / math.sqrt(in_features)
    # stored as (in, out) so the kernel does x @ W  (== x @ W_torch.T)
    w = jax.random.uniform(kw, (in_features, out_features), dtype,
                           minval=-bound, maxval=bound)
    b = jax.random.uniform(kb, (1, out_features), dtype,
                           minval=-bound, maxval=bound)
    return w, b


def _reference(x, w1, b1, w2, b2):
    # Plain JAX reference emulating the kernel's bf16 inputs / f32 accumulation.
    xb = x.astype(jnp.bfloat16).astype(jnp.float32)
    w1b = w1.astype(jnp.bfloat16).astype(jnp.float32)
    w2b = w2.astype(jnp.bfloat16).astype(jnp.float32)
    h = jnp.maximum(xb @ w1b + b1, 0.0)
    h = h.astype(jnp.bfloat16).astype(jnp.float32)
    return jnp.maximum(h @ w2b + b2, 0.0)


if __name__ == "__main__":
    key = jax.random.PRNGKey(0)
    k_x, k_fc1, k_fc2, k_x2, k_fc3, k_fc4 = jax.random.split(key, 6)

    # --- small shapes consistent with MLP(in_channels, out_channels) ---
    N, C_in, C_out = 8, 32, 64
    x = jax.random.normal(k_x, (N, C_in), jnp.float32)
    w1, b1 = init_linear_params(k_fc1, C_in, C_out)
    w2, b2 = init_linear_params(k_fc2, C_out, C_out)
    params = prepare_mlp_params(w1, b1, w2, b2)

    out = jax.block_until_ready(mlp_pallas(x, params))
    assert out.shape == (N, C_out)
    ref = _reference(x, w1, b1, w2, b2)
    assert jnp.allclose(out, ref, atol=2e-2, rtol=2e-2), (
        float(jnp.max(jnp.abs(out - ref))))

    # --- exercise the tiled fallback path (hidden-dim accumulation, ragged C) ---
    N2, C_in2, C_out2 = 10, 48, 192          # C_out2 pads to 256 -> 2 hidden chunks
    x2 = jax.random.normal(k_x2, (N2, C_in2), jnp.float32)
    w3, b3 = init_linear_params(k_fc3, C_in2, C_out2)
    w4, b4 = init_linear_params(k_fc4, C_out2, C_out2)
    params2 = prepare_mlp_params(w3, b3, w4, b4)

    out2 = jax.block_until_ready(mlp_pallas(x2, params2, force_tiled=True, tk=128))
    assert out2.shape == (N2, C_out2)
    ref2 = _reference(x2, w3, b3, w4, b4)
    assert jnp.allclose(out2, ref2, atol=2e-2, rtol=2e-2), (
        float(jnp.max(jnp.abs(out2 - ref2))))

    print("KERNEL_OK")
</pallas_src>

<mosaic_0001>
module attributes {stable_mosaic.version = 11 : i64} {
  func.func @mlp_kernel_resident(%arg0: i32, %arg1: memref<8x128xbf16, #tpu.memory_space<vmem>>, %arg2: memref<128x128xbf16, #tpu.memory_space<vmem>>, %arg3: memref<1x128xf32, #tpu.memory_space<vmem>>, %arg4: memref<128x128xbf16, #tpu.memory_space<vmem>>, %arg5: memref<1x128xf32, #tpu.memory_space<vmem>>, %arg6: memref<8x128xf32, #tpu.memory_space<vmem>>) attributes {dimension_semantics = [#tpu.dimension_semantics<parallel>], iteration_bounds = array<i64: 1>, scalar_prefetch = 0 : i64, scratch_operands = 0 : i64, tpu.core_type = #tpu.core_type<tc>, window_params = [{transform_indices = @transform_0, window_bounds = array<i64: 8, 128>}, {pipeline_mode = #tpu.pipeline_mode<synchronous>, transform_indices = @transform_1, window_bounds = array<i64: 128, 128>}, {pipeline_mode = #tpu.pipeline_mode<synchronous>, transform_indices = @transform_2, window_bounds = array<i64: 1, 128>}, {pipeline_mode = #tpu.pipeline_mode<synchronous>, transform_indices = @transform_3, window_bounds = array<i64: 128, 128>}, {pipeline_mode = #tpu.pipeline_mode<synchronous>, transform_indices = @transform_4, window_bounds = array<i64: 1, 128>}, {transform_indices = @transform_5, window_bounds = array<i64: 8, 128>}]} {
    %c0 = arith.constant 0 : index
    %c0_0 = arith.constant 0 : index
    %0 = vector.load %arg1[%c0, %c0_0] : memref<8x128xbf16, #tpu.memory_space<vmem>>, vector<8x128xbf16>
    %c0_1 = arith.constant 0 : index
    %c0_2 = arith.constant 0 : index
    %1 = vector.load %arg2[%c0_1, %c0_2] : memref<128x128xbf16, #tpu.memory_space<vmem>>, vector<128x128xbf16>
    %cst = arith.constant dense<0.000000e+00> : vector<8x128xf32>
    %2 = tpu.matmul %0, %1, %cst {dimension_numbers = #tpu.dot_dimension_numbers<[1], [0], [0], [1], [0, 0, 1, 1], [], []>} : vector<8x128xbf16>, vector<128x128xbf16>, vector<8x128xf32> -> vector<8x128xf32>
    %c0_3 = arith.constant 0 : index
    %c0_4 = arith.constant 0 : index
    %3 = vector.load %arg3[%c0_3, %c0_4] : memref<1x128xf32, #tpu.memory_space<vmem>>, vector<1x128xf32>
    %4 = vector.broadcast %3 : vector<1x128xf32> to vector<8x128xf32>
    %5 = arith.addf %2, %4 : vector<8x128xf32>
    %cst_5 = arith.constant 0.000000e+00 : f32
    %6 = vector.broadcast %cst_5 : f32 to vector<8x128xf32>
    %7 = arith.maximumf %5, %6 : vector<8x128xf32>
    %8 = arith.truncf %7 : vector<8x128xf32> to vector<8x128xbf16>
    %c0_6 = arith.constant 0 : index
    %c0_7 = arith.constant 0 : index
    %9 = vector.load %arg4[%c0_6, %c0_7] : memref<128x128xbf16, #tpu.memory_space<vmem>>, vector<128x128xbf16>
    %cst_8 = arith.constant dense<0.000000e+00> : vector<8x128xf32>
    %10 = tpu.matmul %8, %9, %cst_8 {dimension_numbers = #tpu.dot_dimension_numbers<[1], [0], [0], [1], [0, 0, 1, 1], [], []>} : vector<8x128xbf16>, vector<128x128xbf16>, vector<8x128xf32> -> vector<8x128xf32>
    %c0_9 = arith.constant 0 : index
    %c0_10 = arith.constant 0 : index
    %11 = vector.load %arg5[%c0_9, %c0_10] : memref<1x128xf32, #tpu.memory_space<vmem>>, vector<1x128xf32>
    %12 = vector.broadcast %11 : vector<1x128xf32> to vector<8x128xf32>
    %13 = arith.addf %10, %12 : vector<8x128xf32>
    %cst_11 = arith.constant 0.000000e+00 : f32
    %14 = vector.broadcast %cst_11 : f32 to vector<8x128xf32>
    %15 = arith.maximumf %13, %14 : vector<8x128xf32>
    %c0_12 = arith.constant 0 : index
    %c0_13 = arith.constant 0 : index
    %16 = vector.load %arg6[%c0_12, %c0_13] : memref<8x128xf32, #tpu.memory_space<vmem>>, vector<8x128xf32>
    tpu.vector_store %arg6[%c0_12, %c0_13], %15 {strides = array<i32>} : memref<8x128xf32, #tpu.memory_space<vmem>>, vector<8x128xf32>,
    return
  }
  func.func @transform_0(%arg0: i32) -> (i32, i32) {
    %c0_i32 = arith.constant 0 : i32
    %c0_i32_0 = arith.constant 0 : i32
    return %arg0, %c0_i32 : i32, i32
  }
  func.func @transform_1(%arg0: i32) -> (i32, i32) {
    %c0_i32 = arith.constant 0 : i32
    %c0_i32_0 = arith.constant 0 : i32
    %c0_i32_1 = arith.constant 0 : i32
    return %c0_i32, %c0_i32_0 : i32, i32
  }
  func.func @transform_2(%arg0: i32) -> (i32, i32) {
    %c0_i32 = arith.constant 0 : i32
    %c0_i32_0 = arith.constant 0 : i32
    %c0_i32_1 = arith.constant 0 : i32
    return %c0_i32, %c0_i32_0 : i32, i32
  }
  func.func @transform_3(%arg0: i32) -> (i32, i32) {
    %c0_i32 = arith.constant 0 : i32
    %c0_i32_0 = arith.constant 0 : i32
    %c0_i32_1 = arith.constant 0 : i32
    return %c0_i32, %c0_i32_0 : i32, i32
  }
  func.func @transform_4(%arg0: i32) -> (i32, i32) {
    %c0_i32 = arith.constant 0 : i32
    %c0_i32_0 = arith.constant 0 : i32
    %c0_i32_1 = arith.constant 0 : i32
    return %c0_i32, %c0_i32_0 : i32, i32
  }
  func.func @transform_5(%arg0: i32) -> (i32, i32) {
    %c0_i32 = arith.constant 0 : i32
    %c0_i32_0 = arith.constant 0 : i32
    return %arg0, %c0_i32 : i32, i32
  }
}

</mosaic_0001>

<bundles_post_ra>
// kernel: tpu_custom_call.1
= control target key start
LH: loop header
LB: loop body
LE: loop exit
PB: predicated region body
PF: predicated region fallthrough
CT: control target
= control target key end

     0   :  { %10 = vsyncpa [#allocation3], 0  ;;  %s495_s0 = inlined_call_operand.hbm [shape: bf16[8,128], index: 0, kind: input, shape index: {}]   ;;  %s496_s1 = inlined_call_operand.hbm [shape: bf16[128,128], index: 1, kind: input, shape index: {}]   ;;  %s497_s2 = inlined_call_operand.vmem [shape: f32[1,128], index: 2, kind: input, shape index: {}]   ;;  %s498_s3 = inlined_call_operand.hbm [shape: bf16[128,128], index: 3, kind: input, shape index: {}]   ;;  %s499_s4 = inlined_call_operand.vmem [shape: f32[1,128], index: 4, kind: input, shape index: {}]   ;;  %s500_s5 = inlined_call_operand.hbm [shape: f32[8,128], index: 5, kind: output, shape index: {}]  }
   0x1   :  { %11 = vsyncpa [#allocation6], 0  ;;  %s28_s20 = sshll.u32 %s496_s1, 4  ;;  %s29_s20 = int_to_ptr.hbm [resolvable:$true] %s28_s20 }
   0x2   :  { %12 = vsyncpa [#allocation4], 0  ;;  %s441_s21 = smov [#allocation5]   ;;  %s18_s25 = sshll.u32 %s495_s0, 4  ;;  %s19_s25 = int_to_ptr.hbm [resolvable:$true] %s18_s25 }
   0x3   :  { %s30_s22 = sshll.u32 %s441_s21, 4  ;;  %s442_s26 = smov 64   ;;  %s31_s22 = int_to_ptr.vmem [resolvable:$true] %s30_s22 }
   0x4   :  { %s443_s27 = smov 4   ;;  %s444_s28 = smov [#allocation2]  }
   0x5   :  { %36 = dma.hbm_to_vmem [thread:$0]  %s29_s20, 1024, %s31_s22, [#allocation6], %s442_s26, %s442_s26, %s443_s27  }
   0x6   :  { %s20_s29 = sshll.u32 %s444_s28, 4  ;;  %s43_s7 = sshll.u32 %s498_s3, 4  ;;  %s21_s29 = int_to_ptr.vmem [resolvable:$true] %s20_s29  ;;  %s44_s7 = int_to_ptr.hbm [resolvable:$true] %s43_s7 }
   0x7   :  { %23 = dma.hbm_to_vmem [thread:$0]  %s19_s25, 64, %s21_s29, [#allocation3]  }
   0x8   :  { %s445_s1 = smov [#allocation7]  }
   0x9   :  { %s45_s8 = sshll.u32 %s445_s1, 4  ;;  %s46_s8 = int_to_ptr.vmem [resolvable:$true] %s45_s8 }
   0xa   :  { %51 = dma.hbm_to_vmem [thread:$0]  %s44_s7, 1024, %s46_s8, [#allocation6], %s442_s26, %s442_s26, %s443_s27  }
   0xb   :  { %435 = dma.done.wait [#allocation3], 64  }
   0xc   :  { %436 = vsyncadd [#allocation3], 4294967232 }
   0xd   :  { %437 = dma.done.wait [#allocation6], 2048  }
   0xe   :  { %438 = vsyncadd [#allocation6], 4294965248  ;;  %v322_v0 = vld [vmem:[#allocation5 + $0x38] sm:$0xff]  ;;  %v321_v1 = vld [vmem:[#allocation5 + $0x30] sm:$0xff]  ;;  %s446_s11 = smov [#allocation8]   ;;  %s240_s15 = sshll.u32 %s500_s5, 4  ;;  %s241_s15 = int_to_ptr.hbm [resolvable:$true] %s240_s15 }
   0xf   :  { %135 = vmatpush.bf16.msra.mxu0 %v322_v0  ;;  %v330_v2 = vld [vmem:[#allocation7 + $0x38] sm:$0xff]  ;;  %v329_v3 = vld [vmem:[#allocation7 + $0x30] sm:$0xff]  ;;  %v320_v4 = vld [vmem:[#allocation5 + $0x28] sm:$0xff]  ;;  %s238_s12 = sshll.u32 %s446_s11, 4  ;;  %s239_s12 = int_to_ptr.vmem [resolvable:$true] %s238_s12 }
  0x10   :  { %218 = vmatpush.bf16.msra.mxu1 %v330_v2  ;;  %v328_v5 = vld [vmem:[#allocation7 + $0x28] sm:$0xff]  ;;  %v319_v6 = vld [vmem:[#allocation5 + $0x20] sm:$0xff]  ;;  %v318_v8 = vld [vmem:[#allocation5 + $0x18] sm:$0xff] }
  0x11   :  { %v327_v7 = vld [vmem:[#allocation7 + $0x20] sm:$0xff]  ;;  %v326_v9 = vld [vmem:[#allocation7 + $0x18] sm:$0xff]  ;;  %v317_v10 = vld [vmem:[#allocation5 + $0x10] sm:$0xff] }
  0x12   :  { %v325_v11 = vld [vmem:[#allocation7 + $0x10] sm:$0xff]  ;;  %v316_v12 = vld [vmem:[#allocation5 + $0x8] sm:$0xff]  ;;  %v315_v13 = vld [vmem:[#allocation5] sm:$0xff] }
  0x13   :  { %136 = vmatpush.bf16.msra.mxu0 %v321_v1  ;;  %v66_v14 = vld [vmem:[#allocation2] sm:$0xf]  ;;  %v324_v15 = vld [vmem:[#allocation7 + $0x8] sm:$0xff]  ;;  %v323_v16 = vld [vmem:[#allocation7] sm:$0xff] }
  0x14   :  { %219 = vmatpush.bf16.msra.mxu1 %v329_v3  ;;  %v337_v17 = vld [vmem:[%s497_s2] ss:$0 sm:$0xff] }
  0x15   :  { %v338_v23 = vld [vmem:[%s499_s4] ss:$0 sm:$0xff] }
  0x17   :  { %137 = vmatpush.bf16.msra.mxu0 %v320_v4 }
  0x18   :  { %220 = vmatpush.bf16.msra.mxu1 %v328_v5 }
  0x1b   :  { %138 = vmatpush.bf16.msra.mxu0 %v319_v6 }
  0x1c   :  { %221 = vmatpush.bf16.msra.mxu1 %v327_v7 }
  0x1f   :  { %139 = vmatpush.bf16.msra.mxu0 %v318_v8 }
  0x20   :  { %222 = vmatpush.bf16.msra.mxu1 %v326_v9 }
  0x23   :  { %140 = vmatpush.bf16.msra.mxu0 %v317_v10 }
  0x24   :  { %223 = vmatpush.bf16.msra.mxu1 %v325_v11 }
  0x27   :  { %141 = vmatpush.bf16.msra.mxu0 %v316_v12 }
  0x28   :  { %224 = vmatpush.bf16.msra.mxu1 %v324_v15 }
  0x2b   :  { %142 = vmatpush.bf16.msra.mxu0 %v315_v13 }
  0x2c   :  { %225 = vmatpush.bf16.msra.mxu1 %v323_v16 }
  0x2e   :  { %143 = vmatmul.bf16.vlgmr.msra.gmra.mxu0 %v66_v14 }
  0xab   :  { %v144_v18 = vpop.f32.mrf.mxu0 }
  0xac   :  { %v145_v19 = vadd.f32 %v337_v17, %v144_v18 }
  0xae   :  { %v148_v20 = vmax.f32 %v145_v19, 0.0 }
  0xb0   :  { %v149_v21 = vpack.c.bf16 %v148_v20, %v148_v20 }
  0xb2   :  { %226 = vmatmul.bf16.vlgmr.msra.gmra.mxu1 %v149_v21 }
  0xb3   :  { %v146_v22 = vpop.f32.mrf.mxu0 }
 0x12f   :  { %v227_v24 = vpop.f32.mrf.mxu1 }
 0x130   :  { %v228_v25 = vadd.f32 %v338_v23, %v227_v24 }
 0x132   :  { %v231_v26 = vmax.f32 %v228_v25, 0.0 }
 0x134   :  { %232 = vst [vmem:[#allocation8] sm:$0xff] %v231_v26 }
 0x135   :  { %243 = dma.vmem_to_hbm [thread:$0]  %s239_s12, 128, %s241_s15, [#allocation4]  }
 0x137   :  { %v229_v27 = vpop.f32.mrf.mxu1 }
 0x138   :  { %439 = dma.done.wait [#allocation4], 128  }
 0x139   :  { %440 = vsyncadd [#allocation4], 4294967168 }
 0x13a   :  { %248 = vsyncpa [#allocation3], 1 }
 0x13b   :  { %249 = vsyncpa [#allocation6], 1 }
 0x13c   :  { %250 = vsyncpa [#allocation4], 1 }

</bundles_post_ra>
